<compile_context>
chip_gen: v5e
topology: v5e:2x2
jax: 0.10.0
libtpu: 0.0.40
codegen_flags: <defaults>
</compile_context>

<pallas_src>
import functools

import jax
import jax.numpy as jnp
from jax.experimental import pallas as pl
from jax.experimental.pallas import tpu as pltpu

_MAG_EPS = 1e-8   # harmonic.magnitude uses sqrt(re^2 + im^2 + eps)


def _round_up(v, m):
    return -(-v // m) * m


def _gate_kernel(x_ref, w1_ref, b1_ref, w2_ref, b2_ref, o_ref, *, approx_sigmoid):
    """Blocks: x/o (2, B_BLK, C, TILE_N); w1/w2 (C, C); b1/b2 (C, 1) — all VMEM."""
    w1 = w1_ref[...]
    b1 = b1_ref[...]
    w2 = w2_ref[...]
    b2 = b2_ref[...]
    b_blk = x_ref.shape[1]
    for b in range(b_blk):                              # small static unroll
        xb = x_ref[:, b, :, :]                          # (2, C, TILE_N)
        xf = xb if xb.dtype == jnp.float32 else xb.astype(jnp.float32)
        m = jnp.sqrt(xf[0] * xf[0] + xf[1] * xf[1] + _MAG_EPS)          # (C, TILE_N)

        # 1x1 conv #1 + ReLU   (MXU matmul, bias/relu on VPU)
        h = jnp.dot(w1, m, preferred_element_type=jnp.float32,
                    precision=jax.lax.Precision.HIGHEST) + b1
        h = jnp.maximum(h, 0.0)

        # 1x1 conv #2 + sigmoid (MXU matmul, exp + reciprocal on EUP)
        z = jnp.dot(w2, h, preferred_element_type=jnp.float32,
                    precision=jax.lax.Precision.HIGHEST) + b2
        g = pl.reciprocal(1.0 + jnp.exp(-z), approx=approx_sigmoid)     # sigmoid(z)

        out = xf * g[None]                              # single fused gate, (2, C, TILE_N)
        o_ref[:, b, :, :] = out if out.dtype == o_ref.dtype else out.astype(o_ref.dtype)


def _step_footprint_bytes(b_blk, C, tile_n, itemsize):
    """Double-buffered VMEM bytes for one grid step (with sublane padding)."""
    c8 = _round_up(C, 8)
    io_block = 2 * b_blk * c8 * tile_n * itemsize       # one x or out block
    data = 2 * 2 * io_block                             # {x, out} x double-buffer
    w_block = c8 * _round_up(C, 128) * 4                # (C, C) f32, tile-padded
    bias_block = c8 * 128 * 4                           # (C, 1) f32, tile-padded
    params = 2 * 2 * (w_block + bias_block)             # {w1,b1,w2,b2} double-buffered
    return data + params


def _choose_blocks(B, C, N_pad, itemsize, *,
                   vmem_budget_bytes=40 << 20,   # conservative: fits v7x's 64 MiB VMEM
                   max_tile_n=32768,
                   target_step_bytes=1 << 20,    # aim for >= ~1 MiB of HBM traffic/step
                   min_steps=4):                 # keep both v7x TCs fed + pipelining
    """Pick (batch_block, lane_tile) for data blocks of shape (2, b_blk, C, tile_n)."""
    cands = {N_pad, 32768, 16384, 8192, 4096, 2048, 1024, 512, 256, 128}
    cands = sorted((c for c in cands
                    if c <= min(N_pad, max_tile_n) and N_pad % c == 0),
                   reverse=True)
    fitting = [c for c in cands
               if _step_footprint_bytes(1, C, c, itemsize) <= vmem_budget_bytes]
    if not fitting:
        # TODO(synk): for very large C also tile the channel dim and accumulate in
        # VMEM scratch; fall back to the smallest lane tile here.
        fitting = [128]

    # Largest fitting tile; prefer a (still >= target-traffic) smaller tile if it
    # restores >= min_steps grid steps for megacore sharding + double buffering.
    tile_n = fitting[0]
    for c in fitting:                                   # descending
        steps = B * (N_pad // c)
        step_bytes = 2 * (2 * C * c * itemsize)         # in + out per step
        if steps >= min_steps and step_bytes >= target_step_bytes:
            tile_n = c
            break

    # Small spatial extents: block several batch elements per step so each grid
    # step still moves ~MiB of HBM traffic (amortise the ~0.35us/step overhead).
    b_blk = 1
    if tile_n == N_pad:
        per_b_bytes = 2 * (2 * C * tile_n * itemsize)
        for cand in sorted(d for d in range(2, B + 1) if B % d == 0):
            if _step_footprint_bytes(cand, C, tile_n, itemsize) > vmem_budget_bytes:
                break
            if b_blk * per_b_bytes >= target_step_bytes:
                break
            b_blk = cand
    return b_blk, tile_n


def scalar_gate_pallas(x, w1, b1, w2, b2, *, approx_sigmoid=True):
    """Forward pass of _ScalarGate (mult=2; dim=2 or 3 via flattened spatial dims).

    x : (2, B, C, *spatial), float32 or bfloat16 (math is done in f32 in-kernel)
    w1, w2 : (C, C) or (C, C, 1, 1[, 1])  -- Conv weights with 1x1 spatial dims
    b1, b2 : (C,)
    """
    # TODO(synk): mult=1 variant (single conv, no ReLU) is not wired up here.
    two, B, C = x.shape[:3]
    assert two == 2
    N = 1
    for s in x.shape[3:]:
        N *= s
    N_pad = _round_up(N, 128)

    # Channels-first, spatially flattened: pure reshape, no transpose pass.
    x_flat = x.reshape(2, B, C, N)
    if N_pad != N:
        # Keep stores unmasked / lane-dense.  The 1x1 convs are pointwise in
        # space, the padded pixels are zero and get sliced off, so real
        # outputs are unaffected.
        x_flat = jnp.pad(x_flat, ((0, 0), (0, 0), (0, 0), (0, N_pad - N)))

    itemsize = jnp.dtype(x.dtype).itemsize
    b_blk, tile_n = _choose_blocks(B, C, N_pad, itemsize)
    grid = (B // b_blk, N_pad // tile_n)

    w1 = jnp.asarray(w1, jnp.float32).reshape(C, C)
    w2 = jnp.asarray(w2, jnp.float32).reshape(C, C)
    b1 = jnp.asarray(b1, jnp.float32).reshape(C, 1)
    b2 = jnp.asarray(b2, jnp.float32).reshape(C, 1)

    io_spec = pl.BlockSpec((2, b_blk, C, tile_n), lambda b, n: (0, b, 0, n))
    w_spec = pl.BlockSpec((C, C), lambda b, n: (0, 0))
    bias_spec = pl.BlockSpec((C, 1), lambda b, n: (0, 0))

    footprint = _step_footprint_bytes(b_blk, C, tile_n, itemsize)
    vmem_limit = int(min(48 << 20, max(footprint + (4 << 20), 16 << 20)))

    out = pl.pallas_call(
        functools.partial(_gate_kernel, approx_sigmoid=approx_sigmoid),
        out_shape=jax.ShapeDtypeStruct((2, B, C, N_pad), x.dtype),
        grid=grid,
        in_specs=[io_spec, w_spec, bias_spec, w_spec, bias_spec],
        out_specs=io_spec,
        compiler_params=pltpu.CompilerParams(
            dimension_semantics=("parallel", "parallel"),
            vmem_limit_bytes=vmem_limit,
        ),
    )(x_flat, w1, b1, w2, b2)

    if N_pad != N:
        out = out[..., :N]
    return out.reshape(x.shape)


def _reference(x, w1, b1, w2, b2):
    """Pure-JAX f32 reference of the PyTorch forward (weights in (C_out, C_in))."""
    hi = jax.lax.Precision.HIGHEST
    xr, xi = x[0], x[1]                                  # (B, C, H, W)
    m = jnp.sqrt(xr * xr + xi * xi + _MAG_EPS)
    h = jnp.einsum('oc,bchw->bohw', w1, m, precision=hi) + b1[None, :, None, None]
    h = jnp.maximum(h, 0.0)
    g = jnp.einsum('oc,bchw->bohw', w2, h, precision=hi) + b2[None, :, None, None]
    g = jax.nn.sigmoid(g)
    return x * g[None]


if __name__ == "__main__":
    # repr=(2, 2) -> total_fmaps = 4 channels; dim=2, mult=2
    repr_ = (2, 2)
    C = sum(repr_)
    B, H, W = 2, 16, 16

    key = jax.random.PRNGKey(0)
    kx, kw1, kb1, kw2, kb2 = jax.random.split(key, 5)

    x = jax.random.normal(kx, (2, B, C, H, W), dtype=jnp.float32)
    # PyTorch Conv2d weight layout (C_out, C_in, 1, 1), spatial dims squeezed.
    w1 = jax.random.normal(kw1, (C, C), dtype=jnp.float32) * 0.3
    b1 = jax.random.normal(kb1, (C,), dtype=jnp.float32) * 0.1
    w2 = jax.random.normal(kw2, (C, C), dtype=jnp.float32) * 0.3
    b2 = jax.random.normal(kb2, (C,), dtype=jnp.float32) * 0.1

    ref = jax.block_until_ready(_reference(x, w1, b1, w2, b2))

    # Exact-sigmoid path: tight check against the pure-JAX f32 reference.
    out_exact = jax.block_until_ready(
        scalar_gate_pallas(x, w1, b1, w2, b2, approx_sigmoid=False))
    assert out_exact.shape == x.shape
    assert jnp.allclose(out_exact, ref, atol=1e-4, rtol=1e-4)

    # Default fast path: approximate EUP reciprocal inside the sigmoid, so use a
    # correspondingly looser (but still bug-catching) tolerance.
    out_fast = jax.block_until_ready(scalar_gate_pallas(x, w1, b1, w2, b2))
    assert jnp.allclose(out_fast, ref, atol=5e-3, rtol=5e-3)

    # Non-128-multiple spatial extent exercises the lane-padding path.
    x_odd = jax.random.normal(kx, (2, B, C, 10, 10), dtype=jnp.float32)
    ref_odd = jax.block_until_ready(_reference(x_odd, w1, b1, w2, b2))
    out_odd = jax.block_until_ready(
        scalar_gate_pallas(x_odd, w1, b1, w2, b2, approx_sigmoid=False))
    assert jnp.allclose(out_odd, ref_odd, atol=1e-4, rtol=1e-4)

    print("KERNEL_OK")
</pallas_src>

<mosaic_0001>
module attributes {stable_mosaic.version = 11 : i64} {
  func.func @_gate_kernel(%arg0: i32, %arg1: i32, %arg2: memref<2x2x4x256xf32, #tpu.memory_space<vmem>>, %arg3: memref<4x4xf32, #tpu.memory_space<vmem>>, %arg4: memref<4x1xf32, #tpu.memory_space<vmem>>, %arg5: memref<4x4xf32, #tpu.memory_space<vmem>>, %arg6: memref<4x1xf32, #tpu.memory_space<vmem>>, %arg7: memref<2x2x4x256xf32, #tpu.memory_space<vmem>>) attributes {dimension_semantics = [#tpu.dimension_semantics<parallel>, #tpu.dimension_semantics<parallel>], iteration_bounds = array<i64: 1, 1>, scalar_prefetch = 0 : i64, scratch_operands = 0 : i64, tpu.core_type = #tpu.core_type<tc>, window_params = [{transform_indices = @transform_0, window_bounds = array<i64: 2, 2, 4, 256>}, {pipeline_mode = #tpu.pipeline_mode<synchronous>, transform_indices = @transform_1, window_bounds = array<i64: 4, 4>}, {pipeline_mode = #tpu.pipeline_mode<synchronous>, transform_indices = @transform_2, window_bounds = array<i64: 4, 1>}, {pipeline_mode = #tpu.pipeline_mode<synchronous>, transform_indices = @transform_3, window_bounds = array<i64: 4, 4>}, {pipeline_mode = #tpu.pipeline_mode<synchronous>, transform_indices = @transform_4, window_bounds = array<i64: 4, 1>}, {transform_indices = @transform_5, window_bounds = array<i64: 2, 2, 4, 256>}]} {
    %c0 = arith.constant 0 : index
    %c0_0 = arith.constant 0 : index
    %0 = vector.load %arg3[%c0, %c0_0] : memref<4x4xf32, #tpu.memory_space<vmem>>, vector<4x4xf32>
    %c0_1 = arith.constant 0 : index
    %c0_2 = arith.constant 0 : index
    %1 = vector.load %arg4[%c0_1, %c0_2] : memref<4x1xf32, #tpu.memory_space<vmem>>, vector<4x1xf32>
    %c0_3 = arith.constant 0 : index
    %c0_4 = arith.constant 0 : index
    %2 = vector.load %arg5[%c0_3, %c0_4] : memref<4x4xf32, #tpu.memory_space<vmem>>, vector<4x4xf32>
    %c0_5 = arith.constant 0 : index
    %c0_6 = arith.constant 0 : index
    %3 = vector.load %arg6[%c0_5, %c0_6] : memref<4x1xf32, #tpu.memory_space<vmem>>, vector<4x1xf32>
    %c0_7 = arith.constant 0 : index
    %c0_8 = arith.constant 0 : index
    %c0_9 = arith.constant 0 : index
    %c0_10 = arith.constant 0 : index
    %4 = vector.load %arg2[%c0_7, %c0_8, %c0_9, %c0_10] : memref<2x2x4x256xf32, #tpu.memory_space<vmem>>, vector<2x1x4x256xf32>
    %5 = vector.shape_cast %4 : vector<2x1x4x256xf32> to vector<2x4x256xf32>
    %6 = vector.extract_strided_slice %5 {offsets = [0, 0, 0], sizes = [1, 4, 256], strides = [1, 1, 1]} : vector<2x4x256xf32> to vector<1x4x256xf32>
    %7 = vector.shape_cast %6 : vector<1x4x256xf32> to vector<4x256xf32>
    %8 = vector.extract_strided_slice %5 {offsets = [0, 0, 0], sizes = [1, 4, 256], strides = [1, 1, 1]} : vector<2x4x256xf32> to vector<1x4x256xf32>
    %9 = vector.shape_cast %8 : vector<1x4x256xf32> to vector<4x256xf32>
    %10 = arith.mulf %7, %9 : vector<4x256xf32>
    %11 = vector.extract_strided_slice %5 {offsets = [1, 0, 0], sizes = [1, 4, 256], strides = [1, 1, 1]} : vector<2x4x256xf32> to vector<1x4x256xf32>
    %12 = vector.shape_cast %11 : vector<1x4x256xf32> to vector<4x256xf32>
    %13 = vector.extract_strided_slice %5 {offsets = [1, 0, 0], sizes = [1, 4, 256], strides = [1, 1, 1]} : vector<2x4x256xf32> to vector<1x4x256xf32>
    %14 = vector.shape_cast %13 : vector<1x4x256xf32> to vector<4x256xf32>
    %15 = arith.mulf %12, %14 : vector<4x256xf32>
    %16 = arith.addf %10, %15 : vector<4x256xf32>
    %cst = arith.constant 9.99999993E-9 : f32
    %17 = vector.broadcast %cst : f32 to vector<4x256xf32>
    %18 = arith.addf %16, %17 : vector<4x256xf32>
    %19 = math.sqrt %18 : vector<4x256xf32>
    %cst_11 = arith.constant dense<0.000000e+00> : vector<4x256xf32>
    %20 = tpu.matmul %0, %19, %cst_11 {dimension_numbers = #tpu.dot_dimension_numbers<[1], [0], [0], [1], [0, 0, 1, 1], [], []>, precision = #tpu.contract_precision<fp32>} : vector<4x4xf32>, vector<4x256xf32>, vector<4x256xf32> -> vector<4x256xf32>
    %21 = vector.broadcast %1 : vector<4x1xf32> to vector<4x256xf32>
    %22 = arith.addf %20, %21 : vector<4x256xf32>
    %cst_12 = arith.constant 0.000000e+00 : f32
    %23 = vector.broadcast %cst_12 : f32 to vector<4x256xf32>
    %24 = arith.maximumf %22, %23 : vector<4x256xf32>
    %cst_13 = arith.constant dense<0.000000e+00> : vector<4x256xf32>
    %25 = tpu.matmul %2, %24, %cst_13 {dimension_numbers = #tpu.dot_dimension_numbers<[1], [0], [0], [1], [0, 0, 1, 1], [], []>, precision = #tpu.contract_precision<fp32>} : vector<4x4xf32>, vector<4x256xf32>, vector<4x256xf32> -> vector<4x256xf32>
    %26 = vector.broadcast %3 : vector<4x1xf32> to vector<4x256xf32>
    %27 = arith.addf %25, %26 : vector<4x256xf32>
    %cst_14 = arith.constant 0.000000e+00 : f32
    %28 = vector.broadcast %cst_14 : f32 to vector<4x256xf32>
    %29 = arith.subf %28, %27 : vector<4x256xf32>
    %30 = math.exp %29 : vector<4x256xf32>
    %cst_15 = arith.constant 1.000000e+00 : f32
    %31 = vector.broadcast %cst_15 : f32 to vector<4x256xf32>
    %32 = arith.addf %31, %30 : vector<4x256xf32>
    %33 = tpu.reciprocal %32 : vector<4x256xf32> -> vector<4x256xf32>
    %34 = vector.shape_cast %33 : vector<4x256xf32> to vector<1x4x256xf32>
    %35 = vector.broadcast %34 : vector<1x4x256xf32> to vector<2x4x256xf32>
    %36 = arith.mulf %5, %35 : vector<2x4x256xf32>
    %c0_16 = arith.constant 0 : index
    %c0_17 = arith.constant 0 : index
    %c0_18 = arith.constant 0 : index
    %c0_19 = arith.constant 0 : index
    %37 = vector.load %arg7[%c0_16, %c0_17, %c0_18, %c0_19] : memref<2x2x4x256xf32, #tpu.memory_space<vmem>>, vector<2x1x4x256xf32>
    %38 = vector.shape_cast %37 : vector<2x1x4x256xf32> to vector<2x4x256xf32>
    %39 = vector.shape_cast %36 : vector<2x4x256xf32> to vector<2x1x4x256xf32>
    tpu.vector_store %arg7[%c0_16, %c0_17, %c0_18, %c0_19], %39 {strides = array<i32>} : memref<2x2x4x256xf32, #tpu.memory_space<vmem>>, vector<2x1x4x256xf32>,
    %c0_20 = arith.constant 0 : index
    %c1 = arith.constant 1 : index
    %c0_21 = arith.constant 0 : index
    %c0_22 = arith.constant 0 : index
    %40 = vector.load %arg2[%c0_20, %c1, %c0_21, %c0_22] : memref<2x2x4x256xf32, #tpu.memory_space<vmem>>, vector<2x1x4x256xf32>
    %41 = vector.shape_cast %40 : vector<2x1x4x256xf32> to vector<2x4x256xf32>
    %42 = vector.extract_strided_slice %41 {offsets = [0, 0, 0], sizes = [1, 4, 256], strides = [1, 1, 1]} : vector<2x4x256xf32> to vector<1x4x256xf32>
    %43 = vector.shape_cast %42 : vector<1x4x256xf32> to vector<4x256xf32>
    %44 = vector.extract_strided_slice %41 {offsets = [0, 0, 0], sizes = [1, 4, 256], strides = [1, 1, 1]} : vector<2x4x256xf32> to vector<1x4x256xf32>
    %45 = vector.shape_cast %44 : vector<1x4x256xf32> to vector<4x256xf32>
    %46 = arith.mulf %43, %45 : vector<4x256xf32>
    %47 = vector.extract_strided_slice %41 {offsets = [1, 0, 0], sizes = [1, 4, 256], strides = [1, 1, 1]} : vector<2x4x256xf32> to vector<1x4x256xf32>
    %48 = vector.shape_cast %47 : vector<1x4x256xf32> to vector<4x256xf32>
    %49 = vector.extract_strided_slice %41 {offsets = [1, 0, 0], sizes = [1, 4, 256], strides = [1, 1, 1]} : vector<2x4x256xf32> to vector<1x4x256xf32>
    %50 = vector.shape_cast %49 : vector<1x4x256xf32> to vector<4x256xf32>
    %51 = arith.mulf %48, %50 : vector<4x256xf32>
    %52 = arith.addf %46, %51 : vector<4x256xf32>
    %cst_23 = arith.constant 9.99999993E-9 : f32
    %53 = vector.broadcast %cst_23 : f32 to vector<4x256xf32>
    %54 = arith.addf %52, %53 : vector<4x256xf32>
    %55 = math.sqrt %54 : vector<4x256xf32>
    %cst_24 = arith.constant dense<0.000000e+00> : vector<4x256xf32>
    %56 = tpu.matmul %0, %55, %cst_24 {dimension_numbers = #tpu.dot_dimension_numbers<[1], [0], [0], [1], [0, 0, 1, 1], [], []>, precision = #tpu.contract_precision<fp32>} : vector<4x4xf32>, vector<4x256xf32>, vector<4x256xf32> -> vector<4x256xf32>
    %57 = vector.broadcast %1 : vector<4x1xf32> to vector<4x256xf32>
    %58 = arith.addf %56, %57 : vector<4x256xf32>
    %cst_25 = arith.constant 0.000000e+00 : f32
    %59 = vector.broadcast %cst_25 : f32 to vector<4x256xf32>
    %60 = arith.maximumf %58, %59 : vector<4x256xf32>
    %cst_26 = arith.constant dense<0.000000e+00> : vector<4x256xf32>
    %61 = tpu.matmul %2, %60, %cst_26 {dimension_numbers = #tpu.dot_dimension_numbers<[1], [0], [0], [1], [0, 0, 1, 1], [], []>, precision = #tpu.contract_precision<fp32>} : vector<4x4xf32>, vector<4x256xf32>, vector<4x256xf32> -> vector<4x256xf32>
    %62 = vector.broadcast %3 : vector<4x1xf32> to vector<4x256xf32>
    %63 = arith.addf %61, %62 : vector<4x256xf32>
    %cst_27 = arith.constant 0.000000e+00 : f32
    %64 = vector.broadcast %cst_27 : f32 to vector<4x256xf32>
    %65 = arith.subf %64, %63 : vector<4x256xf32>
    %66 = math.exp %65 : vector<4x256xf32>
    %cst_28 = arith.constant 1.000000e+00 : f32
    %67 = vector.broadcast %cst_28 : f32 to vector<4x256xf32>
    %68 = arith.addf %67, %66 : vector<4x256xf32>
    %69 = tpu.reciprocal %68 : vector<4x256xf32> -> vector<4x256xf32>
    %70 = vector.shape_cast %69 : vector<4x256xf32> to vector<1x4x256xf32>
    %71 = vector.broadcast %70 : vector<1x4x256xf32> to vector<2x4x256xf32>
    %72 = arith.mulf %41, %71 : vector<2x4x256xf32>
    %c0_29 = arith.constant 0 : index
    %c1_30 = arith.constant 1 : index
    %c0_31 = arith.constant 0 : index
    %c0_32 = arith.constant 0 : index
    %73 = vector.load %arg7[%c0_29, %c1_30, %c0_31, %c0_32] : memref<2x2x4x256xf32, #tpu.memory_space<vmem>>, vector<2x1x4x256xf32>
    %74 = vector.shape_cast %73 : vector<2x1x4x256xf32> to vector<2x4x256xf32>
    %75 = vector.shape_cast %72 : vector<2x4x256xf32> to vector<2x1x4x256xf32>
    tpu.vector_store %arg7[%c0_29, %c1_30, %c0_31, %c0_32], %75 {strides = array<i32>} : memref<2x2x4x256xf32, #tpu.memory_space<vmem>>, vector<2x1x4x256xf32>,
    return
  }
  func.func @transform_0(%arg0: i32, %arg1: i32) -> (i32, i32, i32, i32) {
    %c0_i32 = arith.constant 0 : i32
    %c0_i32_0 = arith.constant 0 : i32
    %c0_i32_1 = arith.constant 0 : i32
    return %c0_i32, %arg0, %c0_i32_0, %arg1 : i32, i32, i32, i32
  }
  func.func @transform_1(%arg0: i32, %arg1: i32) -> (i32, i32) {
    %c0_i32 = arith.constant 0 : i32
    %c0_i32_0 = arith.constant 0 : i32
    %c0_i32_1 = arith.constant 0 : i32
    return %c0_i32, %c0_i32_0 : i32, i32
  }
  func.func @transform_2(%arg0: i32, %arg1: i32) -> (i32, i32) {
    %c0_i32 = arith.constant 0 : i32
    %c0_i32_0 = arith.constant 0 : i32
    %c0_i32_1 = arith.constant 0 : i32
    return %c0_i32, %c0_i32_0 : i32, i32
  }
  func.func @transform_3(%arg0: i32, %arg1: i32) -> (i32, i32) {
    %c0_i32 = arith.constant 0 : i32
    %c0_i32_0 = arith.constant 0 : i32
    %c0_i32_1 = arith.constant 0 : i32
    return %c0_i32, %c0_i32_0 : i32, i32
  }
  func.func @transform_4(%arg0: i32, %arg1: i32) -> (i32, i32) {
    %c0_i32 = arith.constant 0 : i32
    %c0_i32_0 = arith.constant 0 : i32
    %c0_i32_1 = arith.constant 0 : i32
    return %c0_i32, %c0_i32_0 : i32, i32
  }
  func.func @transform_5(%arg0: i32, %arg1: i32) -> (i32, i32, i32, i32) {
    %c0_i32 = arith.constant 0 : i32
    %c0_i32_0 = arith.constant 0 : i32
    %c0_i32_1 = arith.constant 0 : i32
    return %c0_i32, %arg0, %c0_i32_0, %arg1 : i32, i32, i32, i32
  }
}

</mosaic_0001>

<bundles_post_ra>
// kernel: tpu_custom_call.1
= control target key start
LH: loop header
LB: loop body
LE: loop exit
PB: predicated region body
PF: predicated region fallthrough
CT: control target
= control target key end

     0   :  { %10 = vsyncpa [#allocation3], 0  ;;  %s1679_s0 = inlined_call_operand.hbm [shape: f32[2,2,4,256], index: 0, kind: input, shape index: {}]   ;;  %s1680_s1 = inlined_call_operand.vmem [shape: f32[4,4], index: 1, kind: input, shape index: {}]   ;;  %s1681_s2 = inlined_call_operand.vmem [shape: f32[4,1], index: 2, kind: input, shape index: {}]   ;;  %s1682_s3 = inlined_call_operand.vmem [shape: f32[4,4], index: 3, kind: input, shape index: {}]   ;;  %s1683_s4 = inlined_call_operand.vmem [shape: f32[4,1], index: 4, kind: input, shape index: {}]   ;;  %s1684_s5 = inlined_call_operand.hbm [shape: f32[2,2,4,256], index: 5, kind: output, shape index: {}]  }
   0x1   :  { %11 = vsyncpa [#allocation4], 0  ;;  %s16_s20 = sshll.u32 %s1679_s0, 4  ;;  %s1484_s21 = smov [#allocation2]   ;;  %s17_s20 = int_to_ptr.hbm [resolvable:$true] %s16_s20 }
   0x2   :  { %s18_s22 = sshll.u32 %s1484_s21, 4  ;;  %s1485_s23 = smov 128   ;;  %s19_s22 = int_to_ptr.vmem [resolvable:$true] %s18_s22 }
   0x3   :  { %s1486_s24 = smov 8  }
   0x4   :  { %24 = dma.hbm_to_vmem [thread:$0]  %s17_s20, 512, %s19_s22, [#allocation3], %s1485_s23, %s1485_s23, %s1486_s24  }
   0x5   :  { %1480 = dma.done.wait [#allocation3], 512  }
   0x6   :  { %1481 = vsyncadd [#allocation3], 4294966784  ;;  %v1525_v0 = vld [vmem:[#allocation2] sm:$0xff]  ;;  %v1527_v1 = vld [vmem:[#allocation2 + $0x10] sm:$0xff]  ;;  %vm68_vm0 = vcmask 31744   ;;  %v1487_v18 = vmov 0  }
   0x7   :  { %v43_v2 = vmul.f32 %v1525_v0, %v1525_v0  ;;  %v44_v3 = vmul.f32 %v1527_v1, %v1527_v1  ;;  %v37_v8 = vld [vmem:[%s1680_s1] sm:$0xf]  ;;  %v1536_v10 = vld [vmem:[#allocation2 + $0x8] sm:$0xff]  ;;  %1411 = vset.pattern.permute.xlu0 %v1487_v18  ;;  %vm72_vm3 = vcmask 1043456   ;;  %s1393_s7 = sshll.u32 %s1684_s5, 4  ;;  %s1394_s7 = int_to_ptr.hbm [resolvable:$true] %s1393_s7 }
   0x8   :  { %v1538_v11 = vld [vmem:[#allocation2 + $0x18] sm:$0xff]  ;;  %v70_v12 = vsel %vm68_vm0, %v37_v8, 0  ;;  %v725_v13 = vmul.f32 %v1536_v10, %v1536_v10 }
   0x9   :  { %v45_v4 = vadd.f32 %v44_v3, %v43_v2  ;;  %v726_v14 = vmul.f32 %v1538_v11, %v1538_v11  ;;  %v38_v16 = vld [vmem:[%s1681_s2] sm:$0xf]  ;;  %v1548_v20 = vand.u32 4294901760, %v70_v12 }
   0xa   :  { %61 = vperm.xlu0 %1411, %v38_v16   ;;  %v40_v27 = vld [vmem:[%s1683_s4] sm:$0xf] }
   0xb   :  { %v46_v5 = vadd.f32 1e-08, %v45_v4  ;;  %v727_v17 = vadd.f32 %v726_v14, %v725_v13  ;;  %v1551_v25 = vsub.f32 %v70_v12, %v1548_v20  ;;  %v39_v56 = vld [vmem:[%s1682_s3] sm:$0xf]  ;;  %s1488_s3 = smov [#allocation5]  }
   0xc   :  { %v377_v58 = vsel %vm68_vm0, %v39_v56, 0  ;;  %s1391_s29 = sshll.u32 %s1488_s3, 4  ;;  %s1392_s29 = int_to_ptr.vmem [resolvable:$true] %s1391_s29 }
   0xd   :  { %1412 = vrsqrt.f32 %v46_v5  ;;  %v728_v21 = vadd.f32 1e-08, %v727_v17  ;;  %vm54_vm1 = vcmp.eq.f32.partialorder %v46_v5, inf  ;;  %v57_v23 = vand.u32 2147483648, %v46_v5 }
   0xe   :  { %vm56_vm2 = vcmp.eq.f32.partialorder %v46_v5, 0.0  ;;  %v1557_v29 = vand.u32 4294901760, %v1551_v25  ;;  %v1583_v60 = vand.u32 4294901760, %v377_v58 }
   0xf   :  { %1414 = vrsqrt.f32 %v728_v21  ;;  %vm736_vm4 = vcmp.eq.f32.partialorder %v728_v21, inf  ;;  %v739_v45 = vand.u32 2147483648, %v728_v21  ;;  %vm738_vm5 = vcmp.eq.f32.partialorder %v728_v21, 0.0 }
  0x10   :  { %v97_v32 = vsub.f32 %v1551_v25, %v1557_v29  ;;  %v1587_v3 = vsub.f32 %v377_v58, %v1583_v60 }
  0x12   :  { %373 = vperm.xlu0 %1411, %v40_v27   ;;  %v1562_v38 = vand.u32 4294901760, %v97_v32  ;;  %v1590_v8 = vand.u32 4294901760, %v1587_v3 }
  0x13   :  { %v1413_v6 = vpop.eup %1412 }
  0x14   :  { %v48_v7 = vmul.f32 %v1413_v6, %v46_v5  ;;  %v405_v18 = vsub.f32 %v1587_v3, %v1590_v8 }
  0x15   :  { %v1415_v30 = vpop.eup %1414 }
  0x16   :  { %v49_v9 = vmul.f32 %v1413_v6, %v48_v7  ;;  %v730_v31 = vmul.f32 %v1415_v30, %v728_v21 }
  0x18   :  { %v50_v15 = vmul.f32 0.5, %v49_v9  ;;  %v731_v33 = vmul.f32 %v1415_v30, %v730_v31 }
  0x1a   :  { %v51_v19 = vsub.f32 1.5, %v50_v15  ;;  %v732_v34 = vmul.f32 0.5, %v731_v33 }
  0x1c   :  { %v52_v22 = vmul.f32 %v1413_v6, %v51_v19  ;;  %v733_v40 = vsub.f32 1.5, %v732_v34 }
  0x1e   :  { %v53_v24 = vmul.f32 %v52_v22, %v46_v5  ;;  %v734_v43 = vmul.f32 %v1415_v30, %v733_v40 }
  0x20   :  { %v55_v26 = vsel %vm54_vm1, %v46_v5, %v53_v24  ;;  %v735_v47 = vmul.f32 %v734_v43, %v728_v21 }
  0x21   :  { %v58_v28 = vsel %vm56_vm2, %v57_v23, %v55_v26  ;;  %v1597_v26 = vand.u32 4294901760, %v405_v18 }
  0x22   :  { %65 = vst [vmem:[#allocation1] ss:$2 sm:$0xff] %v58_v28  ;;  %v737_v50 = vsel %vm736_vm4, %v728_v21, %v735_v47 }
  0x23   :  { %v740_v52 = vsel %vm738_vm5, %v739_v45, %v737_v50 }
  0x29   :  { %v66_v35 = vld.sshfl [vmem:[#allocation1] sm:$0xff pattern:$0x75316420]  ;;  %v67_v36 = vld.sshfl [vmem:[#allocation1 + $0x8] sm:$0xff pattern:$0x75316420] }
  0x2a   :  { %v73_v37 = vsel %vm72_vm3, %v66_v35, 0  ;;  %v75_v39 = vsel %vm72_vm3, %v67_v36, 0  ;;  %742 = vst [vmem:[#allocation1] ss:$2 sm:$0xff] %v740_v52 }
  0x2b   :  { %v92_v41 = vand.u32 4294901760, %v73_v37  ;;  %v238_v42 = vand.u32 4294901760, %v75_v39 }
  0x2d   :  { %v119_v44 = vsub.f32 %v73_v37, %v92_v41  ;;  %93 = vmatpush.msra.mxu0 %v92_v41  ;;  %169 = vmatpush.msra.mxu3 %v92_v41  ;;  %v265_v46 = vsub.f32 %v75_v39, %v238_v42 }
  0x2e   :  { %99 = vmatmul.f32.vlgmr.msra.gmra.mxu0 %v1562_v38  ;;  %173 = vmatmul.f32.vlgmr.msra.gmra.mxu3 %v1557_v29 }
  0x2f   :  { %146 = vmatpush.msra.mxu2 %v119_v44  ;;  %v120_v48 = vand.u32 4294901760, %v119_v44  ;;  %v266_v49 = vand.u32 4294901760, %v265_v46 }
  0x30   :  { %149 = vmatmul.f32.vlgmr.msra.gmra.mxu2 %v1551_v25 }
  0x31   :  { %v121_v51 = vsub.f32 %v119_v44, %v120_v48  ;;  %239 = vmatpush.msrb.mxu2 %v238_v42  ;;  %195 = vmatpush.msrb.mxu0 %v120_v48  ;;  %v267_v53 = vsub.f32 %v265_v46, %v266_v49  ;;  %v743_v15 = vld.sshfl [vmem:[#allocation1] sm:$0xff pattern:$0x75316420] }
  0x32   :  { %v745_v22 = vsel %vm72_vm3, %v743_v15, 0 }
  0x33   :  { %292 = vmatpush.msra.mxu0 %v265_v46  ;;  %341 = vmatpush.msra.mxu2 %v266_v49  ;;  %v122_v54 = vand.u32 4294901760, %v121_v51  ;;  %v268_v55 = vand.u32 4294901760, %v267_v53  ;;  %v764_v28 = vand.u32 4294901760, %v745_v22 }
  0x35   :  { %123 = vmatpush.msra.mxu1 %v122_v54  ;;  %269 = vmatpush.msrb.mxu3 %v268_v55  ;;  %v791_v37 = vsub.f32 %v745_v22, %v764_v28 }
  0x36   :  { %125 = vmatmul.f32.vlgmr.msra.gmra.mxu1 %v1548_v20  ;;  %197 = vmatmul.f32.vlgmr.msrb.gmra.mxu0 %v1548_v20 }
  0x37   :  { %271 = vmatmul.f32.vlgmr.msrb.gmra.mxu3 %v1548_v20  ;;  %217 = vmatpush.msrb.mxu1 %v92_v41  ;;  %v744_v41 = vld.sshfl [vmem:[#allocation1 + $0x8] sm:$0xff pattern:$0x75316420]  ;;  %v792_v44 = vand.u32 4294901760, %v791_v37 }
  0x38   :  { %245 = vmatmul.f32.vlgmr.msrb.gmra.mxu2 %v1562_v38  ;;  %363 = vmatpush.msra.mxu3 %v238_v42  ;;  %v747_v46 = vsel %vm72_vm3, %v744_v41, 0 }
  0x39   :  { %315 = vmatpush.msra.mxu1 %v238_v42  ;;  %v793_v49 = vsub.f32 %v791_v37, %v792_v44  ;;  %v910_v50 = vand.u32 4294901760, %v747_v46 }
  0x3b   :  { %v794_v53 = vand.u32 4294901760, %v793_v49  ;;  %v937_v54 = vsub.f32 %v747_v46, %v910_v50 }
  0x3e   :  { %219 = vmatmul.f32.vlgmr.msrb.gmra.mxu1 %v1548_v20  ;;  %295 = vmatmul.f32.vlgmr.msra.gmra.mxu0 %v1551_v25 }
  0x3f   :  { %365 = vmatmul.f32.vlgmr.msra.gmra.mxu3 %v1548_v20 }
  0x40   :  { %343 = vmatmul.f32.vlgmr.msra.gmra.mxu2 %v1548_v20 }
  0x46   :  { %319 = vmatmul.f32.vlgmr.msra.gmra.mxu1 %v1557_v29 }
  0x7c   :  { %v1581_v59 = vpop.permute.xlu0 %61 }
  0xab   :  { %v100_v57 = vpop.f32.mrf.mxu0 }
  0xac   :  { %v101_v61 = vadd.f32 %v100_v57, %v1581_v59  ;;  %v938_v57 = vand.u32 4294901760, %v937_v54 }
  0xae   :  { %v939_v58 = vsub.f32 %v937_v54, %v938_v57 }
  0xb1   :  { %v174_v62 = vpop.f32.mrf.mxu3 }
  0xb3   :  { %v126_v63 = vpop.f32.mrf.mxu1  ;;  %v150_v2 = vpop.f32.mrf.mxu2 }
  0xb4   :  { %v127_v4 = vadd.f32 %v126_v63, %v101_v61  ;;  %v198_v5 = vpop.f32.mrf.mxu0  ;;  %v940_v61 = vand.u32 4294901760, %v939_v58  ;;  %v1625_v63 = vpop.permute.xlu0 %373 }
  0xb6   :  { %v151_v6 = vadd.f32 %v150_v2, %v127_v4 }
  0xb8   :  { %v175_v7 = vadd.f32 %v174_v62, %v151_v6 }
  0xba   :  { %v199_v9 = vadd.f32 %v198_v5, %v175_v7  ;;  %v272_v12 = vpop.f32.mrf.mxu3 }
  0xbb   :  { %v220_v13 = vpop.f32.mrf.mxu1  ;;  %v246_v14 = vpop.f32.mrf.mxu2 }
  0xbc   :  { %v221_v16 = vadd.f32 %v220_v13, %v199_v9  ;;  %v247_v17 = vadd.f32 %v246_v14, %v1581_v59  ;;  %v296_v23 = vpop.f32.mrf.mxu0 }
  0xbe   :  { %v369_v19 = vmax.f32 %v221_v16, 0.0  ;;  %v273_v21 = vadd.f32 %v272_v12, %v247_v17 }
  0xc0   :  { %v380_v24 = vsel %vm72_vm3, %v369_v19, 0  ;;  %v297_v30 = vadd.f32 %v296_v23, %v273_v21 }
  0xc1   :  { %v400_v27 = vand.u32 4294901760, %v380_v24 }
  0xc2   :  { %v366_v35 = vpop.f32.mrf.mxu3 }
  0xc3   :  { %v427_v31 = vsub.f32 %v380_v24, %v400_v27  ;;  %v320_v32 = vpop.f32.mrf.mxu1  ;;  %401 = vmatpush.msrb.mxu0 %v400_v27  ;;  %477 = vmatpush.msrb.mxu3 %v400_v27  ;;  %v344_v33 = vpop.f32.mrf.mxu2 }
  0xc4   :  { %v321_v34 = vadd.f32 %v320_v32, %v297_v30  ;;  %407 = vmatmul.f32.vlgmr.msrb.gmra.mxu0 %v1597_v26  ;;  %481 = vmatmul.f32.vlgmr.msrb.gmra.mxu3 %v1590_v8 }
  0xc5   :  { %454 = vmatpush.msrb.mxu2 %v427_v31  ;;  %v428_v36 = vand.u32 4294901760, %v427_v31 }
  0xc6   :  { %v345_v39 = vadd.f32 %v344_v33, %v321_v34  ;;  %457 = vmatmul.f32.vlgmr.msrb.gmra.mxu2 %v1587_v3 }
  0xc7   :  { %503 = vmatpush.msra.mxu0 %v428_v36  ;;  %v429_v40 = vsub.f32 %v427_v31, %v428_v36 }
  0xc8   :  { %v367_v42 = vadd.f32 %v366_v35, %v345_v39 }
  0xc9   :  { %v430_v43 = vand.u32 4294901760, %v429_v40 }
  0xca   :  { %v370_v45 = vmax.f32 %v367_v42, 0.0 }
  0xcb   :  { %431 = vmatpush.msrb.mxu1 %v430_v43 }
  0xcc   :  { %v383_v47 = vsel %vm72_vm3, %v370_v45, 0  ;;  %433 = vmatmul.f32.vlgmr.msrb.gmra.mxu1 %v1583_v60  ;;  %505 = vmatmul.f32.vlgmr.msra.gmra.mxu0 %v1583_v60 }
  0xcd   :  { %v546_v48 = vand.u32 4294901760, %v383_v47  ;;  %525 = vmatpush.msra.mxu1 %v400_v27 }
  0xcf   :  { %v573_v51 = vsub.f32 %v383_v47, %v546_v48  ;;  %547 = vmatpush.msra.mxu2 %v546_v48  ;;  %623 = vmatpush.msrb.mxu1 %v546_v48 }
  0xd0   :  { %553 = vmatmul.f32.vlgmr.msra.gmra.mxu2 %v1597_v26 }
  0xd1   :  { %600 = vmatpush.msrb.mxu0 %v573_v51  ;;  %v574_v52 = vand.u32 4294901760, %v573_v51 }
  0xd3   :  { %765 = vmatpush.msra.mxu0 %v764_v28  ;;  %649 = vmatpush.msrb.mxu2 %v574_v52  ;;  %v575_v55 = vsub.f32 %v573_v51, %v574_v52 }
  0xd4   :  { %527 = vmatmul.f32.vlgmr.msra.gmra.mxu1 %v1583_v60  ;;  %603 = vmatmul.f32.vlgmr.msrb.gmra.mxu0 %v1587_v3 }
  0xd5   :  { %v576_v56 = vand.u32 4294901760, %v575_v55  ;;  %818 = vmatpush.msra.mxu2 %v791_v37  ;;  %795 = vmatpush.msra.mxu1 %v794_v53 }
  0xd6   :  { %867 = vmatpush.msrb.mxu0 %v792_v44 }
  0xd7   :  { %577 = vmatpush.msra.mxu3 %v576_v56 }
  0xd8   :  { %579 = vmatmul.f32.vlgmr.msra.gmra.mxu3 %v1583_v60  ;;  %651 = vmatmul.f32.vlgmr.msrb.gmra.mxu2 %v1583_v60 }
  0xd9   :  { %671 = vmatpush.msrb.mxu3 %v546_v48  ;;  %911 = vmatpush.msrb.mxu2 %v910_v50 }
  0xdb   :  { %841 = vmatpush.msra.mxu3 %v764_v28 }
  0xdc   :  { %627 = vmatmul.f32.vlgmr.msrb.gmra.mxu1 %v1590_v8  ;;  %771 = vmatmul.f32.vlgmr.msra.gmra.mxu0 %v1562_v38 }
  0xdd   :  { %889 = vmatpush.msrb.mxu1 %v764_v28  ;;  %964 = vmatpush.msra.mxu0 %v937_v54 }
  0xe0   :  { %673 = vmatmul.f32.vlgmr.msrb.gmra.mxu3 %v1583_v60  ;;  %821 = vmatmul.f32.vlgmr.msra.gmra.mxu2 %v1551_v25 }
  0xe1   :  { %941 = vmatpush.msrb.mxu3 %v940_v61  ;;  %1013 = vmatpush.msra.mxu2 %v938_v57 }
  0xe4   :  { %797 = vmatmul.f32.vlgmr.msra.gmra.mxu1 %v1548_v20  ;;  %869 = vmatmul.f32.vlgmr.msrb.gmra.mxu0 %v1548_v20 }
  0xe5   :  { %987 = vmatpush.msra.mxu1 %v910_v50 }
  0xe8   :  { %845 = vmatmul.f32.vlgmr.msra.gmra.mxu3 %v1557_v29  ;;  %917 = vmatmul.f32.vlgmr.msrb.gmra.mxu2 %v1562_v38 }
  0xe9   :  { %1035 = vmatpush.msra.mxu3 %v910_v50 }
  0xec   :  { %891 = vmatmul.f32.vlgmr.msrb.gmra.mxu1 %v1548_v20  ;;  %967 = vmatmul.f32.vlgmr.msra.gmra.mxu0 %v1551_v25 }
  0xf0   :  { %943 = vmatmul.f32.vlgmr.msrb.gmra.mxu3 %v1548_v20  ;;  %1015 = vmatmul.f32.vlgmr.msra.gmra.mxu2 %v1548_v20 }
  0xf4   :  { %991 = vmatmul.f32.vlgmr.msra.gmra.mxu1 %v1557_v29 }
  0xf8   :  { %1037 = vmatmul.f32.vlgmr.msra.gmra.mxu3 %v1548_v20 }
 0x141   :  { %v408_v62 = vpop.f32.mrf.mxu0 }
 0x142   :  { %v409_v2 = vadd.f32 %v408_v62, %v1625_v63 }
 0x147   :  { %v482_v6 = vpop.f32.mrf.mxu3 }
 0x149   :  { %v434_v4 = vpop.f32.mrf.mxu1  ;;  %v458_v5 = vpop.f32.mrf.mxu2 }
 0x14a   :  { %v435_v38 = vadd.f32 %v434_v4, %v409_v2  ;;  %v506_v9 = vpop.f32.mrf.mxu0 }
 0x14c   :  { %v459_v7 = vadd.f32 %v458_v5, %v435_v38 }
 0x14e   :  { %v483_v25 = vadd.f32 %v482_v6, %v459_v7 }
 0x150   :  { %v507_v12 = vadd.f32 %v506_v9, %v483_v25 }
 0x151   :  { %v528_v13 = vpop.f32.mrf.mxu1 }
 0x152   :  { %v529_v14 = vadd.f32 %v528_v13, %v507_v12  ;;  %v604_v17 = vpop.f32.mrf.mxu0 }
 0x153   :  { %v554_v15 = vpop.f32.mrf.mxu2 }
 0x154   :  { %v677_v16 = vsub.f32 0.0, %v529_v14  ;;  %v555_v18 = vadd.f32 %v554_v15, %v1625_v63 }
 0x156   :  { %v679_v29 = vmul.f32 1.442695, %v677_v16 }
 0x158   :  { %1416 = vpow2.f32 %v679_v29 }
 0x159   :  { %v628_v20 = vpop.f32.mrf.mxu1 }
 0x15a   :  { %v772_v28 = vpop.f32.mrf.mxu0 }
 0x15b   :  { %v580_v19 = vpop.f32.mrf.mxu3  ;;  %v652_v21 = vpop.f32.mrf.mxu2  ;;  %v773_v34 = vadd.f32 %v772_v28, %v1581_v59 }
 0x15c   :  { %v581_v22 = vadd.f32 %v580_v19, %v555_v18 }
 0x15e   :  { %v605_v23 = vadd.f32 %v604_v17, %v581_v22  ;;  %v1417_v27 = vpop.eup %1416 }
 0x15f   :  { %v1629_v33 = vadd.f32 1.0, %v1417_v27 }
 0x160   :  { %v629_v24 = vadd.f32 %v628_v20, %v605_v23 }
 0x161   :  { %v798_v31 = vpop.f32.mrf.mxu1  ;;  %1418 = vrcp.f32 %v1629_v33  ;;  %vm690_vm8 = vweird.f32 %v1629_v33  ;;  %v696_v22 = vand.u32 2147483648, %v1629_v33 }
 0x162   :  { %v653_v30 = vadd.f32 %v652_v21, %v629_v24  ;;  %v799_v37 = vadd.f32 %v798_v31, %v773_v34  ;;  %v870_v41 = vpop.f32.mrf.mxu0  ;;  %v694_v24 = vand.u32 2147483647, %v1629_v33 }
 0x163   :  { %v674_v32 = vpop.f32.mrf.mxu3  ;;  %v822_v36 = vpop.f32.mrf.mxu2 }
 0x164   :  { %v675_v35 = vadd.f32 %v674_v32, %v653_v30  ;;  %v823_v42 = vadd.f32 %v822_v36, %v799_v37  ;;  %vm695_vm13 = vcmp.eq.f32.partialorder %v694_v24, 8.507059e+37 }
 0x166   :  { %v678_v39 = vsub.f32 0.0, %v675_v35  ;;  %v697_v35 = vor.u32 1.1754944e-38, %v696_v22 }
 0x167   :  { %v1633_v46 = vpop.eup %1418 }
 0x168   :  { %v681_v40 = vmul.f32 1.442695, %v678_v39  ;;  %v686_v51 = vmul.f32 %v1633_v46, %v1629_v33  ;;  %vm691_vm6 = vweird.f32 %v1633_v46 }
 0x169   :  { %v892_v44 = vpop.f32.mrf.mxu1  ;;  %vm1647_vm9 = vmor %vm690_vm8, %vm691_vm6 }
 0x16a   :  { %1420 = vpow2.f32 %v681_v40  ;;  %v968_v56 = vpop.f32.mrf.mxu0  ;;  %v687_v61 = vsub.f32 1.0, %v686_v51 }
 0x16b   :  { %v846_v43 = vpop.f32.mrf.mxu3  ;;  %v918_v48 = vpop.f32.mrf.mxu2 }
 0x16c   :  { %v847_v45 = vadd.f32 %v846_v43, %v823_v42  ;;  %v919_v53 = vadd.f32 %v918_v48, %v1581_v59  ;;  %v688_v7 = vmul.f32 %v1633_v46, %v687_v61 }
 0x16e   :  { %v871_v47 = vadd.f32 %v870_v41, %v847_v45  ;;  %v689_v29 = vadd.f32 %v1633_v46, %v688_v7 }
 0x170   :  { %v1421_v49 = vpop.eup %1420  ;;  %v893_v50 = vadd.f32 %v892_v44, %v871_v47  ;;  %v693_v34 = vsel %vm1647_vm9, %v1633_v46, %v689_v29 }
 0x171   :  { %v684_v52 = vadd.f32 1.0, %v1421_v49  ;;  %v992_v2 = vpop.f32.mrf.mxu1  ;;  %v698_v40 = vsel %vm695_vm13, %v697_v35, %v693_v34 }
 0x172   :  { %v1041_v54 = vmax.f32 %v893_v50, 0.0 }
 0x173   :  { %1422 = vrcp.f32 %v684_v52  ;;  %v944_v55 = vpop.f32.mrf.mxu3  ;;  %v1016_v5 = vpop.f32.mrf.mxu2  ;;  %v710_v17 = vand.u32 2147483648, %v684_v52  ;;  %v708_v19 = vand.u32 2147483647, %v684_v52  ;;  %vm704_vm10 = vweird.f32 %v684_v52 }
 0x174   :  { %v1044_v57 = vsel %vm72_vm3, %v1041_v54, 0  ;;  %v945_v58 = vadd.f32 %v944_v55, %v919_v53 }
 0x175   :  { %v1064_v62 = vand.u32 4294901760, %v1044_v57  ;;  %v711_v30 = vor.u32 1.1754944e-38, %v710_v17  ;;  %vm709_vm12 = vcmp.eq.f32.partialorder %v708_v19, 8.507059e+37 }
 0x176   :  { %v969_v4 = vadd.f32 %v968_v56, %v945_v58 }
 0x177   :  { %v1091_v38 = vsub.f32 %v1044_v57, %v1064_v62  ;;  %1065 = vmatpush.msrb.mxu0 %v1064_v62  ;;  %1141 = vmatpush.msrb.mxu3 %v1064_v62 }
 0x178   :  { %v993_v6 = vadd.f32 %v992_v2, %v969_v4  ;;  %1071 = vmatmul.f32.vlgmr.msrb.gmra.mxu0 %v1597_v26  ;;  %1145 = vmatmul.f32.vlgmr.msrb.gmra.mxu3 %v1590_v8 }
 0x179   :  { %v1423_v59 = vpop.eup %1422  ;;  %1118 = vmatpush.msrb.mxu2 %v1091_v38  ;;  %v1092_v9 = vand.u32 4294901760, %v1091_v38 }
 0x17a   :  { %v700_v25 = vmul.f32 %v1423_v59, %v684_v52  ;;  %v1017_v12 = vadd.f32 %v1016_v5, %v993_v6  ;;  %1121 = vmatmul.f32.vlgmr.msrb.gmra.mxu2 %v1587_v3  ;;  %vm705_vm7 = vweird.f32 %v1423_v59 }
 0x17b   :  { %v1038_v13 = vpop.f32.mrf.mxu3  ;;  %1167 = vmatpush.msra.mxu0 %v1092_v9  ;;  %v1093_v14 = vsub.f32 %v1091_v38, %v1092_v9  ;;  %vm706_vm11 = vmor %vm704_vm10, %vm705_vm7 }
 0x17c   :  { %v701_v15 = vsub.f32 1.0, %v700_v25  ;;  %v1039_v16 = vadd.f32 %v1038_v13, %v1017_v12 }
 0x17d   :  { %v1094_v20 = vand.u32 4294901760, %v1093_v14 }
 0x17e   :  { %v702_v18 = vmul.f32 %v1423_v59, %v701_v15  ;;  %v1042_v21 = vmax.f32 %v1039_v16, 0.0 }
 0x17f   :  { %1095 = vmatpush.msrb.mxu1 %v1094_v20 }
 0x180   :  { %v703_v27 = vadd.f32 %v1423_v59, %v702_v18  ;;  %v1047_v28 = vsel %vm72_vm3, %v1042_v21, 0  ;;  %1097 = vmatmul.f32.vlgmr.msrb.gmra.mxu1 %v1583_v60  ;;  %1169 = vmatmul.f32.vlgmr.msra.gmra.mxu0 %v1583_v60 }
 0x181   :  { %v1210_v31 = vand.u32 4294901760, %v1047_v28  ;;  %1189 = vmatpush.msra.mxu1 %v1064_v62 }
 0x182   :  { %v707_v32 = vsel %vm706_vm11, %v1423_v59, %v703_v27 }
 0x183   :  { %v712_v33 = vsel %vm709_vm12, %v711_v30, %v707_v32  ;;  %v1237_v36 = vsub.f32 %v1047_v28, %v1210_v31  ;;  %1211 = vmatpush.msra.mxu2 %v1210_v31  ;;  %1287 = vmatpush.msrb.mxu1 %v1210_v31 }
 0x184   :  { %1217 = vmatmul.f32.vlgmr.msra.gmra.mxu2 %v1597_v26  ;;  %v715_v37 = vrot.slane %v712_v33, 4 }
 0x185   :  { %1264 = vmatpush.msrb.mxu0 %v1237_v36  ;;  %v1238_v39 = vand.u32 4294901760, %v1237_v36 }
 0x186   :  { %v716_v41 = vsel %vm72_vm3, %v698_v40, %v715_v37 }
 0x187   :  { %1313 = vmatpush.msrb.mxu2 %v1238_v39  ;;  %v1239_v42 = vsub.f32 %v1237_v36, %v1238_v39  ;;  %v718_v43 = vmul.f32 %v716_v41, %v1525_v0  ;;  %v719_v44 = vmul.f32 %v716_v41, %v1527_v1 }
 0x188   :  { %1191 = vmatmul.f32.vlgmr.msra.gmra.mxu1 %v1583_v60  ;;  %1267 = vmatmul.f32.vlgmr.msrb.gmra.mxu0 %v1587_v3 }
 0x189   :  { %v1240_v45 = vand.u32 4294901760, %v1239_v42  ;;  %720 = vst [vmem:[#allocation5] sm:$0xff] %v718_v43 }
 0x18a   :  { %721 = vst [vmem:[#allocation5 + $0x10] sm:$0xff] %v719_v44 }
 0x18b   :  { %1241 = vmatpush.msra.mxu3 %v1240_v45 }
 0x18c   :  { %1243 = vmatmul.f32.vlgmr.msra.gmra.mxu3 %v1583_v60  ;;  %1315 = vmatmul.f32.vlgmr.msrb.gmra.mxu2 %v1583_v60 }
 0x18d   :  { %1335 = vmatpush.msrb.mxu3 %v1210_v31 }
 0x190   :  { %1291 = vmatmul.f32.vlgmr.msrb.gmra.mxu1 %v1590_v8 }
 0x194   :  { %1337 = vmatmul.f32.vlgmr.msrb.gmra.mxu3 %v1583_v60 }
 0x1f5   :  { %v1072_v0 = vpop.f32.mrf.mxu0 }
 0x1f6   :  { %v1073_v1 = vadd.f32 %v1072_v0, %v1625_v63 }
 0x1fb   :  { %v1146_v3 = vpop.f32.mrf.mxu3 }
 0x1fd   :  { %v1098_v26 = vpop.f32.mrf.mxu1  ;;  %v1122_v46 = vpop.f32.mrf.mxu2 }
 0x1fe   :  { %v1099_v47 = vadd.f32 %v1098_v26, %v1073_v1  ;;  %v1170_v49 = vpop.f32.mrf.mxu0 }
 0x200   :  { %v1123_v48 = vadd.f32 %v1122_v46, %v1099_v47 }
 0x202   :  { %v1147_v50 = vadd.f32 %v1146_v3, %v1123_v48 }
 0x204   :  { %v1171_v51 = vadd.f32 %v1170_v49, %v1147_v50 }
 0x205   :  { %v1192_v52 = vpop.f32.mrf.mxu1 }
 0x206   :  { %v1193_v53 = vadd.f32 %v1192_v52, %v1171_v51  ;;  %v1268_v60 = vpop.f32.mrf.mxu0 }
 0x207   :  { %v1218_v55 = vpop.f32.mrf.mxu2 }
 0x208   :  { %v1341_v54 = vsub.f32 0.0, %v1193_v53  ;;  %v1219_v8 = vadd.f32 %v1218_v55, %v1625_v63 }
 0x20a   :  { %v1343_v56 = vmul.f32 1.442695, %v1341_v54 }
 0x20c   :  { %1424 = vpow2.f32 %v1343_v56 }
 0x20d   :  { %v1292_v61 = vpop.f32.mrf.mxu1 }
 0x20f   :  { %v1244_v57 = vpop.f32.mrf.mxu3  ;;  %v1316_v2 = vpop.f32.mrf.mxu2 }
 0x210   :  { %v1245_v58 = vadd.f32 %v1244_v57, %v1219_v8 }
 0x212   :  { %v1269_v62 = vadd.f32 %v1268_v60, %v1245_v58  ;;  %v1425_v38 = vpop.eup %1424 }
 0x213   :  { %v1347_v7 = vadd.f32 1.0, %v1425_v38 }
 0x214   :  { %v1293_v4 = vadd.f32 %v1292_v61, %v1269_v62 }
 0x215   :  { %1426 = vrcp.f32 %v1347_v7  ;;  %vm1354_vm0 = vweird.f32 %v1347_v7  ;;  %v1360_v23 = vand.u32 2147483648, %v1347_v7  ;;  %v1358_v24 = vand.u32 2147483647, %v1347_v7 }
 0x216   :  { %v1317_v5 = vadd.f32 %v1316_v2, %v1293_v4 }
 0x217   :  { %v1338_v6 = vpop.f32.mrf.mxu3  ;;  %v1361_v32 = vor.u32 1.1754944e-38, %v1360_v23  ;;  %vm1359_vm6 = vcmp.eq.f32.partialorder %v1358_v24, 8.507059e+37 }
 0x218   :  { %v1339_v59 = vadd.f32 %v1338_v6, %v1317_v5 }
 0x21a   :  { %v1342_v9 = vsub.f32 0.0, %v1339_v59 }
 0x21b   :  { %v1427_v12 = vpop.eup %1426 }
 0x21c   :  { %v1345_v25 = vmul.f32 1.442695, %v1342_v9  ;;  %v1350_v14 = vmul.f32 %v1427_v12, %v1347_v7  ;;  %vm1355_vm14 = vweird.f32 %v1427_v12 }
 0x21d   :  { %vm1356_vm1 = vmor %vm1354_vm0, %vm1355_vm14 }
 0x21e   :  { %1428 = vpow2.f32 %v1345_v25  ;;  %v1351_v15 = vsub.f32 1.0, %v1350_v14 }
 0x220   :  { %v1352_v29 = vmul.f32 %v1427_v12, %v1351_v15 }
 0x222   :  { %v1353_v19 = vadd.f32 %v1427_v12, %v1352_v29 }
 0x224   :  { %v1429_v13 = vpop.eup %1428  ;;  %v1357_v31 = vsel %vm1356_vm1, %v1427_v12, %v1353_v19 }
 0x225   :  { %v1348_v63 = vadd.f32 1.0, %v1429_v13  ;;  %v1362_v33 = vsel %vm1359_vm6, %v1361_v32, %v1357_v31 }
 0x227   :  { %1430 = vrcp.f32 %v1348_v63  ;;  %v1374_v18 = vand.u32 2147483648, %v1348_v63  ;;  %v1372_v22 = vand.u32 2147483647, %v1348_v63  ;;  %vm1368_vm2 = vweird.f32 %v1348_v63 }
 0x229   :  { %v1375_v28 = vor.u32 1.1754944e-38, %v1374_v18  ;;  %vm1373_vm5 = vcmp.eq.f32.partialorder %v1372_v22, 8.507059e+37 }
 0x22d   :  { %v1431_v16 = vpop.eup %1430 }
 0x22e   :  { %v1364_v17 = vmul.f32 %v1431_v16, %v1348_v63  ;;  %vm1369_vm15 = vweird.f32 %v1431_v16 }
 0x22f   :  { %vm1370_vm4 = vmor %vm1368_vm2, %vm1369_vm15 }
 0x230   :  { %v1365_v20 = vsub.f32 1.0, %v1364_v17 }
 0x232   :  { %v1366_v21 = vmul.f32 %v1431_v16, %v1365_v20 }
 0x234   :  { %v1367_v27 = vadd.f32 %v1431_v16, %v1366_v21 }
 0x236   :  { %v1371_v30 = vsel %vm1370_vm4, %v1431_v16, %v1367_v27 }
 0x237   :  { %v1376_v34 = vsel %vm1373_vm5, %v1375_v28, %v1371_v30 }
 0x238   :  { %v1379_v35 = vrot.slane %v1376_v34, 4 }
 0x23a   :  { %v1380_v36 = vsel %vm72_vm3, %v1362_v33, %v1379_v35 }
 0x23b   :  { %v1382_v37 = vmul.f32 %v1380_v36, %v1536_v10  ;;  %v1383_v39 = vmul.f32 %v1380_v36, %v1538_v11 }
 0x23d   :  { %1385 = vst [vmem:[#allocation5 + $0x8] sm:$0xff] %v1382_v37 }
 0x23e   :  { %1386 = vst [vmem:[#allocation5 + $0x18] sm:$0xff] %v1383_v39 }
 0x23f   :  { %1399 = dma.vmem_to_hbm [thread:$0]  %s1392_s29, 512, %s1394_s7, [#allocation4], %s1485_s23, %s1485_s23, %s1486_s24  }
 0x240   :  { %1482 = dma.done.wait [#allocation4], 512  }
 0x241   :  { %1483 = vsyncadd [#allocation4], 4294966784 }
 0x242   :  { %1404 = vsyncpa [#allocation3], 1 }
 0x243   :  { %1405 = vsyncpa [#allocation4], 1 }

</bundles_post_ra>
